<compile_context>
chip_gen: v7x
topology: tpu7x:2x2x1
jax: 0.10.0
libtpu: 0.0.40
codegen_flags: <defaults>
</compile_context>

<pallas_src>
import functools

import jax
import jax.numpy as jnp
import numpy as np
from jax.experimental import pallas as pl
from jax.experimental.pallas import tpu as pltpu


def _norm_kernel(x_ref, w_ref, b_ref, o_ref, *, eps):
    # x_ref: (tile_rows, D), w_ref/b_ref: (1, D), o_ref: (tile_rows, D)
    x = x_ref[...].astype(jnp.float32)
    d = x.shape[-1]
    inv_d = jnp.float32(1.0 / d)
    inv_dm1 = jnp.float32(1.0 / (d - 1))

    # One-pass statistics: a single sweep produces sum and sum-of-squares.
    s1 = jnp.sum(x, axis=-1, keepdims=True)
    s2 = jnp.sum(x * x, axis=-1, keepdims=True)
    mean = s1 * inv_d
    # Unbiased variance (torch.std default: divide by N-1).  Clamp to >= 0 to
    # guard against catastrophic cancellation producing a tiny negative value.
    var = jnp.maximum((s2 - s1 * mean) * inv_dm1, jnp.float32(0.0))
    std = jnp.sqrt(var)

    w = w_ref[...].astype(jnp.float32)
    b = b_ref[...].astype(jnp.float32)
    # bias is per-lane, so denom (and its reciprocal) is a full (tile_rows, D)
    # tensor.  approx=True puts the reciprocal on the EUP (separate VLIW slot);
    # one Newton-Raphson step restores ~f32 accuracy.
    denom = std + jnp.float32(eps) + b
    inv0 = pl.reciprocal(denom, approx=True)
    inv = inv0 * (jnp.float32(2.0) - denom * inv0)

    # Recompute (x - mean) here instead of keeping a separate full-tile f32
    # `diff` live across the variance reduction — frees one f32 tile of
    # vreg/VMEM pressure at the cost of one (DMA-hidden) subtract.
    o_ref[...] = ((w * inv) * (x - mean)).astype(o_ref.dtype)


def _pick_tile_rows(rows, d, itemsize):
    """Largest row tile whose *f32 working* footprint stays under ~4 MiB.

    The kernel upcasts the tile to f32, so the cap is applied to the f32
    footprint (4 bytes/elem) regardless of the input dtype.  With the raw
    double-buffered I/O (2 in + 2 out) plus ~3 f32-sized in-kernel temporaries
    this keeps total VMEM usage under ~32 MiB, safe on every generation
    (v5e/v6e 128 MiB, v7x 64 MiB per TC).
    """
    itemsize = max(int(itemsize), 1)
    # Sublane packing: 8 rows/vreg for 4-byte dtypes, 16 for bf16, 32 for int8.
    sublane = max(8, 32 // itemsize)
    f32_row_bytes = d * 4
    per_buffer_cap_f32 = 4 * 1024 * 1024

    # Guard: a single minimal (sublane, D) f32 tile must fit the budget.
    min_tile_f32 = sublane * f32_row_bytes
    if min_tile_f32 > 16 * 1024 * 1024:
        raise ValueError(
            f"NormLayer Pallas kernel: hidden dim {d} is too large for a single "
            f"(sublane={sublane}, {d}) f32 tile ({min_tile_f32} bytes); split the "
            "hidden dim across a second grid axis (two-pass stats) instead."
        )

    t = max(sublane, per_buffer_cap_f32 // f32_row_bytes)
    t = (t // sublane) * sublane
    # Never make a single tile larger than the (sublane-rounded) problem.
    rows_rounded = ((rows + sublane - 1) // sublane) * sublane
    t = min(t, rows_rounded)
    return max(t, sublane)


def norm_layer_pallas(x, weight, bias, eps=1e-6, tile_rows=None):
    """Applies NormLayer over the last axis of x using a Pallas TPU kernel."""
    orig_shape = x.shape
    d = int(orig_shape[-1])
    rows = 1
    for s in orig_shape[:-1]:
        rows *= int(s)

    x2 = x.reshape(rows, d)
    w2 = weight.reshape(1, d)
    b2 = bias.reshape(1, d)

    itemsize = jnp.dtype(x.dtype).itemsize
    if tile_rows is None:
        tile_rows = _pick_tile_rows(rows, d, itemsize)

    grid = (pl.cdiv(rows, tile_rows),)  # partial tail block is masked by Pallas

    # Scoped VMEM: double-buffered raw I/O tiles + ~3 f32 in-kernel temps +
    # params + headroom.  Clamp to half the physical VMEM of this chip so the
    # request is safe on v7x (64 MiB/TC) while still raising the v5e 16 MiB
    # scoped default.
    try:
        vmem_cap = int(pltpu.get_tpu_info().vmem_capacity_bytes)
    except Exception:  # pragma: no cover - conservative fallback
        vmem_cap = 64 * 1024 * 1024
    tile_raw_bytes = tile_rows * d * int(itemsize)
    tile_f32_bytes = tile_rows * d * 4
    need = 4 * tile_raw_bytes + 3 * tile_f32_bytes + 2 * d * 4 + (4 << 20)
    vmem_limit = int(min(vmem_cap // 2, max(32 * 1024 * 1024, need)))

    param_bytes = 2 * d * jnp.dtype(weight.dtype).itemsize
    cost = pl.CostEstimate(
        # sum, sumsq, center, two scales, etc. — a handful of VALU ops/element.
        flops=10 * rows * d,
        # Reciprocal is full-width (bias is per-lane) + one sqrt per row.
        transcendentals=rows * d + rows,
        bytes_accessed=2 * rows * d * int(itemsize) + int(param_bytes),
    )

    out = pl.pallas_call(
        functools.partial(_norm_kernel, eps=eps),
        out_shape=jax.ShapeDtypeStruct((rows, d), x.dtype),
        grid=grid,
        in_specs=[
            pl.BlockSpec((tile_rows, d), lambda i: (i, 0)),
            pl.BlockSpec((1, d), lambda i: (0, 0)),
            pl.BlockSpec((1, d), lambda i: (0, 0)),
        ],
        out_specs=pl.BlockSpec((tile_rows, d), lambda i: (i, 0)),
        compiler_params=pltpu.CompilerParams(
            dimension_semantics=("parallel",),
            vmem_limit_bytes=vmem_limit,
        ),
        cost_estimate=cost,
    )(x2, w2, b2)
    return out.reshape(orig_shape)


def norm_layer_ref(x, weight, bias, eps=1e-6):
    """Pure-JAX reference matching the PyTorch forward exactly."""
    x32 = x.astype(jnp.float32)
    d = x.shape[-1]
    mean = jnp.mean(x32, axis=-1, keepdims=True)
    diff = x32 - mean
    var = jnp.sum(diff * diff, axis=-1, keepdims=True) / (d - 1)
    std = jnp.sqrt(var)
    return (weight * diff / (std + eps + bias)).astype(x.dtype)


if __name__ == "__main__":
    # Small shapes consistent with the module: batch=2, seq=8, hidden=32.
    batch, seq, hidden = 2, 8, 32
    eps = 1e-6

    key = jax.random.PRNGKey(0)
    x = jax.random.normal(key, (batch, seq, hidden), dtype=jnp.float32)

    # Parameters initialized per the module's __init__:
    # weight = ones(norm_shape), bias = zeros(norm_shape), norm_shape = hidden.
    weight = jnp.ones((hidden,), dtype=jnp.float32)
    bias = jnp.zeros((hidden,), dtype=jnp.float32)

    out = norm_layer_pallas(x, weight, bias, eps=eps)
    out = jax.block_until_ready(out)
    ref = norm_layer_ref(x, weight, bias, eps=eps)
    np.testing.assert_allclose(np.asarray(out), np.asarray(ref), rtol=1e-5, atol=1e-5)

    # Also exercise the masked-tail path (rows not a multiple of tile_rows) with
    # non-trivial weight/bias, still at small shapes.
    x3 = jax.random.normal(jax.random.PRNGKey(1), (3, 5, hidden), dtype=jnp.float32)
    w3 = 1.0 + 0.1 * jax.random.normal(jax.random.PRNGKey(2), (hidden,), dtype=jnp.float32)
    b3 = 0.05 * jax.random.normal(jax.random.PRNGKey(3), (hidden,), dtype=jnp.float32)
    out3 = jax.block_until_ready(norm_layer_pallas(x3, w3, b3, eps=eps))
    ref3 = norm_layer_ref(x3, w3, b3, eps=eps)
    np.testing.assert_allclose(np.asarray(out3), np.asarray(ref3), rtol=1e-5, atol=1e-5)

    # bf16 path exercises the smaller raw-buffer / f32-working-footprint sizing.
    xb = jax.random.normal(jax.random.PRNGKey(4), (batch, seq, hidden), dtype=jnp.bfloat16)
    outb = jax.block_until_ready(norm_layer_pallas(xb, weight, bias, eps=eps))
    refb = norm_layer_ref(xb, weight, bias, eps=eps)
    np.testing.assert_allclose(
        np.asarray(outb, dtype=np.float32), np.asarray(refb, dtype=np.float32),
        rtol=2e-2, atol=2e-2)

    print("KERNEL_OK")
</pallas_src>

<mosaic_0001>
module attributes {stable_mosaic.version = 11 : i64} {
  func.func @_norm_kernel(%arg0: i32, %arg1: memref<16x32xf32, #tpu.memory_space<vmem>>, %arg2: memref<1x32xf32, #tpu.memory_space<vmem>>, %arg3: memref<1x32xf32, #tpu.memory_space<vmem>>, %arg4: memref<16x32xf32, #tpu.memory_space<vmem>>) attributes {dimension_semantics = [#tpu.dimension_semantics<parallel>], iteration_bounds = array<i64: 1>, scalar_prefetch = 0 : i64, scratch_operands = 0 : i64, tpu.core_type = #tpu.core_type<tc>, window_params = [{transform_indices = @transform_0, window_bounds = array<i64: 16, 32>}, {pipeline_mode = #tpu.pipeline_mode<synchronous>, transform_indices = @transform_1, window_bounds = array<i64: 1, 32>}, {pipeline_mode = #tpu.pipeline_mode<synchronous>, transform_indices = @transform_2, window_bounds = array<i64: 1, 32>}, {transform_indices = @transform_3, window_bounds = array<i64: 16, 32>}]} {
    %c0 = arith.constant 0 : index
    %c0_0 = arith.constant 0 : index
    %0 = vector.load %arg1[%c0, %c0_0] : memref<16x32xf32, #tpu.memory_space<vmem>>, vector<16x32xf32>
    %cst = arith.constant dense<0.000000e+00> : vector<16xf32>
    %1 = vector.multi_reduction <add>, %0, %cst [1] : vector<16x32xf32> to vector<16xf32>
    %2 = vector.shape_cast %1 : vector<16xf32> to vector<16x1xf32>
    %3 = arith.mulf %0, %0 : vector<16x32xf32>
    %cst_1 = arith.constant dense<0.000000e+00> : vector<16xf32>
    %4 = vector.multi_reduction <add>, %3, %cst_1 [1] : vector<16x32xf32> to vector<16xf32>
    %5 = vector.shape_cast %4 : vector<16xf32> to vector<16x1xf32>
    %cst_2 = arith.constant 3.125000e-02 : f32
    %6 = vector.broadcast %cst_2 : f32 to vector<16x1xf32>
    %7 = arith.mulf %2, %6 : vector<16x1xf32>
    %8 = arith.mulf %2, %7 : vector<16x1xf32>
    %9 = arith.subf %5, %8 : vector<16x1xf32>
    %cst_3 = arith.constant 0.0322580636 : f32
    %10 = vector.broadcast %cst_3 : f32 to vector<16x1xf32>
    %11 = arith.mulf %9, %10 : vector<16x1xf32>
    %cst_4 = arith.constant 0.000000e+00 : f32
    %12 = vector.broadcast %cst_4 : f32 to vector<16x1xf32>
    %13 = arith.maximumf %11, %12 : vector<16x1xf32>
    %14 = math.sqrt %13 : vector<16x1xf32>
    %c0_5 = arith.constant 0 : index
    %c0_6 = arith.constant 0 : index
    %15 = vector.load %arg2[%c0_5, %c0_6] : memref<1x32xf32, #tpu.memory_space<vmem>>, vector<1x32xf32>
    %c0_7 = arith.constant 0 : index
    %c0_8 = arith.constant 0 : index
    %16 = vector.load %arg3[%c0_7, %c0_8] : memref<1x32xf32, #tpu.memory_space<vmem>>, vector<1x32xf32>
    %cst_9 = arith.constant 9.99999997E-7 : f32
    %17 = vector.broadcast %cst_9 : f32 to vector<16x1xf32>
    %18 = arith.addf %14, %17 : vector<16x1xf32>
    %19 = vector.broadcast %18 : vector<16x1xf32> to vector<16x32xf32>
    %20 = vector.broadcast %16 : vector<1x32xf32> to vector<16x32xf32>
    %21 = arith.addf %19, %20 : vector<16x32xf32>
    %22 = tpu.reciprocal %21 {approx = true} : vector<16x32xf32> -> vector<16x32xf32>
    %23 = arith.mulf %21, %22 : vector<16x32xf32>
    %cst_10 = arith.constant 2.000000e+00 : f32
    %24 = vector.broadcast %cst_10 : f32 to vector<16x32xf32>
    %25 = arith.subf %24, %23 : vector<16x32xf32>
    %26 = arith.mulf %22, %25 : vector<16x32xf32>
    %27 = vector.broadcast %15 : vector<1x32xf32> to vector<16x32xf32>
    %28 = arith.mulf %27, %26 : vector<16x32xf32>
    %29 = vector.broadcast %7 : vector<16x1xf32> to vector<16x32xf32>
    %30 = arith.subf %0, %29 : vector<16x32xf32>
    %31 = arith.mulf %28, %30 : vector<16x32xf32>
    %c0_11 = arith.constant 0 : index
    %c0_12 = arith.constant 0 : index
    %32 = vector.load %arg4[%c0_11, %c0_12] : memref<16x32xf32, #tpu.memory_space<vmem>>, vector<16x32xf32>
    tpu.vector_store %arg4[%c0_11, %c0_12], %31 {strides = array<i32>} : memref<16x32xf32, #tpu.memory_space<vmem>>, vector<16x32xf32>,
    return
  }
  func.func @transform_0(%arg0: i32) -> (i32, i32) {
    %c0_i32 = arith.constant 0 : i32
    %c0_i32_0 = arith.constant 0 : i32
    return %arg0, %c0_i32 : i32, i32
  }
  func.func @transform_1(%arg0: i32) -> (i32, i32) {
    %c0_i32 = arith.constant 0 : i32
    %c0_i32_0 = arith.constant 0 : i32
    %c0_i32_1 = arith.constant 0 : i32
    return %c0_i32, %c0_i32_0 : i32, i32
  }
  func.func @transform_2(%arg0: i32) -> (i32, i32) {
    %c0_i32 = arith.constant 0 : i32
    %c0_i32_0 = arith.constant 0 : i32
    %c0_i32_1 = arith.constant 0 : i32
    return %c0_i32, %c0_i32_0 : i32, i32
  }
  func.func @transform_3(%arg0: i32) -> (i32, i32) {
    %c0_i32 = arith.constant 0 : i32
    %c0_i32_0 = arith.constant 0 : i32
    return %arg0, %c0_i32 : i32, i32
  }
}

</mosaic_0001>

<bundles_post_ra>
// kernel: tpu_custom_call.1
= control target key start
LH: loop header
LB: loop body
LE: loop exit
PB: predicated region body
PF: predicated region fallthrough
CT: control target
= control target key end

     0   :  { %8 = vsyncpa [#allocation3], 0  ;;  %s255_s0 = inlined_call_operand.hbm [shape: f32[16,32], index: 0, kind: input, shape index: {}]   ;;  %s256_s1 = inlined_call_operand.vmem [shape: f32[1,32], index: 1, kind: input, shape index: {}]   ;;  %s257_s2 = inlined_call_operand.vmem [shape: f32[1,32], index: 2, kind: input, shape index: {}]   ;;  %s258_s3 = inlined_call_operand.hbm [shape: f32[16,32], index: 3, kind: output, shape index: {}]  }
   0x1   :  { %9 = vsyncpa [#allocation4], 0  ;;  %s183_s12 = smov [#allocation2]   ;;  %s135_s16 = scalar_lea.hbm %s255_s0, 256 }
   0x2   :  { %s15_s13 = sshll.u32 %s183_s12, 4  ;;  %p136_p0 = scmp.ne.s32.totalorder %s255_s0, %s135_s16  ;;  %s16_s13 = int_to_ptr.vmem [resolvable:$true] %s15_s13 }
   0x3   :  { %p139_p1 = scmp.lt.u32.totalorder %s135_s16, %s255_s0 }
   0x5   :  { %p141_p2 = pnand %p139_p1, %p136_p0 }
   0x7   :  { %144 = shalt.err (!%p141_p2)
}
   0x8   :  { %s145_s21 = scalar_lea.vmem %s16_s13, 256  ;;  %p150_p4 = scmp.lt.s32.totalorder %s16_s13, %s16_s13 }
   0x9   :  { %p146_p3 = scmp.ne.s32.totalorder %s16_s13, %s145_s21  ;;  %p151_p5 = scmp.lt.s32.totalorder %s145_s21, %s145_s21 }
   0xb   :  { %p152_p6 = por %p151_p5, %p150_p4 }
   0xd   :  { %p153_p7 = pnand %p152_p6, %p146_p3 }
   0xf   :  { %156 = shalt.err (!%p153_p7)
}
  0x10   :  { %s184_s22 = smov 128   ;;  %s185_s23 = smov 8  }
  0x11   :  { %21 = dma.hbm_to_vmem [thread:$0]  %s255_s0, 256, %s16_s13, [#allocation3], %s184_s22, %s184_s22, %s185_s23  }
  0x12   :  { %179 = dma.done.wait [#allocation3], 256  }
  0x13   :  { %180 = vsyncadd [#allocation3], 4294967040  ;;  %vm31_vm0 = vcmask 261120   ;;  %v29_v0 = vld [vmem:[#allocation2] sm:$0xff]  ;;  %v222_v1 = vld [vmem:[#allocation2 + $0x8] sm:$0xff] }
  0x14   :  { %v32_v2 = vsel %vm31_vm0, %v29_v0, 0.0  ;;  %v38_v3 = vmul.f32 %v29_v0, %v29_v0  ;;  %v39_v4 = vmul.f32 %v222_v1, %v222_v1  ;;  %v35_v6 = vsel %vm31_vm0, %v222_v1, 0.0  ;;  %v121_v27 = vld [vmem:[%s257_s2] ss:$0 sm:$0xff]  ;;  %s186_s2 = smov [#allocation5]  }
  0x15   :  { %33 = vadd.xlane.f32.xlu0 %v32_v2  ;;  %v122_v40 = vld [vmem:[%s256_s1] ss:$0 sm:$0xff]  ;;  %s109_s29 = sshll.u32 %s186_s2, 4  ;;  %s110_s29 = int_to_ptr.vmem [resolvable:$true] %s109_s29 }
  0x16   :  { %v40_v5 = vsel %vm31_vm0, %v38_v3, 0.0  ;;  %v43_v7 = vsel %vm31_vm0, %v39_v4, 0.0  ;;  %s157_s1 = scalar_lea.vmem %s110_s29, 256  ;;  %p162_p9 = scmp.lt.s32.totalorder %s110_s29, %s110_s29 }
  0x17   :  { %41 = vadd.xlane.f32.xlu1 %v40_v5  ;;  %p158_p8 = scmp.ne.s32.totalorder %s110_s29, %s157_s1  ;;  %p163_p10 = scmp.lt.s32.totalorder %s157_s1, %s157_s1 }
  0x19   :  { %36 = vadd.xlane.f32.xlu0 %v35_v6  ;;  %p164_p11 = por %p163_p10, %p162_p9 }
  0x1b   :  { %44 = vadd.xlane.f32.xlu1 %v43_v7  ;;  %p165_p12 = pnand %p164_p11, %p158_p8 }
  0xa2   :  { %v34_v8 = vpop.xlane.xlu0 %33 }
  0xa3   :  { %v46_v9 = vmul.f32 0.03125, %v34_v8 }
  0xa4   :  { %v42_v10 = vpop.xlane.xlu1 %41 }
  0xa5   :  { %v48_v11 = vmul.f32 %v46_v9, %v34_v8  ;;  %v98_v44 = vsub.f32 %v29_v0, %v46_v9 }
  0xa6   :  { %v37_v12 = vpop.xlane.xlu0 %36 }
  0xa7   :  { %v50_v13 = vsub.f32 %v42_v10, %v48_v11  ;;  %v47_v14 = vmul.f32 0.03125, %v37_v12 }
  0xa8   :  { %v45_v15 = vpop.xlane.xlu1 %44 }
  0xa9   :  { %v52_v16 = vmul.f32 0.032258064, %v50_v13  ;;  %v49_v17 = vmul.f32 %v47_v14, %v37_v12  ;;  %v99_v49 = vsub.f32 %v222_v1, %v47_v14 }
  0xab   :  { %v54_v18 = vmax.f32 %v52_v16, 0.0  ;;  %v51_v19 = vsub.f32 %v45_v15, %v49_v17 }
  0xad   :  { %127 = vrsqrt.f32 %v54_v18  ;;  %v53_v20 = vmul.f32 0.032258064, %v51_v19  ;;  %vm58_vm1 = vcmp.eq.f32.partialorder %v54_v18, inf  ;;  %v61_v24 = vand.u32 2147483648, %v54_v18 }
  0xae   :  { %vm60_vm2 = vcmp.eq.f32.partialorder %v54_v18, 0.0 }
  0xaf   :  { %v55_v21 = vmax.f32 %v53_v20, 0.0 }
  0xb1   :  { %129 = vrsqrt.f32 %v55_v21  ;;  %vm65_vm3 = vcmp.eq.f32.partialorder %v55_v21, inf  ;;  %v68_v31 = vand.u32 2147483648, %v55_v21  ;;  %vm67_vm4 = vcmp.eq.f32.partialorder %v55_v21, 0.0 }
  0xb7   :  { %v128_v22 = vpop.eup %127 }
  0xb8   :  { %v57_v23 = vmul.f32 %v128_v22, %v54_v18 }
  0xba   :  { %v59_v25 = vsel %vm58_vm1, %v54_v18, %v57_v23 }
  0xbb   :  { %v62_v26 = vsel %vm60_vm2, %v61_v24, %v59_v25  ;;  %v130_v28 = vpop.eup %129 }
  0xbc   :  { %v72_v29 = vadd.f32 1e-06, %v62_v26  ;;  %v64_v30 = vmul.f32 %v130_v28, %v55_v21 }
  0xbe   :  { %v80_v32 = vadd.f32 %v121_v27, %v72_v29  ;;  %v66_v33 = vsel %vm65_vm3, %v55_v21, %v64_v30 }
  0xbf   :  { %v69_v34 = vsel %vm67_vm4, %v68_v31, %v66_v33 }
  0xc0   :  { %131 = vrcp.f32 %v80_v32  ;;  %v73_v35 = vadd.f32 1e-06, %v69_v34 }
  0xc2   :  { %v81_v36 = vadd.f32 %v121_v27, %v73_v35 }
  0xc4   :  { %133 = vrcp.f32 %v81_v36 }
  0xca   :  { %v132_v37 = vpop.eup %131 }
  0xcb   :  { %v84_v38 = vmul.f32 %v132_v37, %v80_v32 }
  0xcd   :  { %v86_v39 = vsub.f32 2.0, %v84_v38 }
  0xce   :  { %v134_v41 = vpop.eup %133 }
  0xcf   :  { %v88_v42 = vmul.f32 %v132_v37, %v86_v39  ;;  %v85_v43 = vmul.f32 %v134_v41, %v81_v36 }
  0xd1   :  { %v96_v45 = vmul.f32 %v122_v40, %v88_v42  ;;  %v87_v46 = vsub.f32 2.0, %v85_v43 }
  0xd3   :  { %v100_v47 = vmul.f32 %v98_v44, %v96_v45  ;;  %v89_v48 = vmul.f32 %v134_v41, %v87_v46 }
  0xd5   :  { %102 = vst.msk [vmem:[#allocation5] sm:$0xff] %vm31_vm0, %v100_v47  ;;  %v97_v50 = vmul.f32 %v122_v40, %v89_v48 }
  0xd7   :  { %v101_v51 = vmul.f32 %v99_v49, %v97_v50 }
  0xd9   :  { %103 = vst.msk [vmem:[#allocation5 + $0x8] sm:$0xff] %vm31_vm0, %v101_v51 }
  0xda   :  { %168 = shalt.err (!%p165_p12)
}
  0xdb   :  { %s169_s5 = scalar_lea.hbm %s258_s3, 256 }
  0xdc   :  { %p170_p13 = scmp.ne.s32.totalorder %s258_s3, %s169_s5  ;;  %p173_p0 = scmp.lt.u32.totalorder %s169_s5, %s258_s3 }
  0xde   :  { %p175_p1 = pnand %p173_p0, %p170_p13 }
  0xe0   :  { %178 = shalt.err (!%p175_p1)
}
  0xe1   :  { %115 = dma.vmem_to_hbm [thread:$0]  %s110_s29, 256, %s258_s3, [#allocation4], %s184_s22, %s184_s22, %s185_s23  }
  0xe2   :  { %181 = dma.done.wait [#allocation4], 256  }
  0xe3   :  { %182 = vsyncadd [#allocation4], 4294967040 }
  0xe4   :  { %119 = vsyncpa [#allocation3], 1 }
  0xe5   :  { %120 = vsyncpa [#allocation4], 1 }

</bundles_post_ra>
